<compile_context>
chip_gen: v5e
topology: v5e:2x2
jax: 0.10.0
libtpu: 0.0.40
codegen_flags: <defaults>
</compile_context>

<pallas_src>
import functools

import jax
import jax.numpy as jnp
from jax.experimental import pallas as pl
from jax.experimental.pallas import tpu as pltpu


def _mish_kernel(x_ref, o_ref):
    x = x_ref[...].astype(jnp.float32)
    # Numerically-safe softplus matching F.softplus(beta=1, threshold=20):
    # clamp the exp argument so the unselected branch never produces inf/NaN.
    sp = jnp.where(x > 20.0, x, jnp.log1p(jnp.exp(jnp.minimum(x, 20.0))))
    o_ref[...] = (x * jnp.tanh(sp)).astype(o_ref.dtype)


def mish(x, *, tile_rows=256, lane_width=1024):
    """Elementwise Mish over an arbitrarily-shaped tensor."""
    orig_shape = x.shape
    dtype = x.dtype
    n = x.size

    w = lane_width
    rows = -(-n // w)                                   # ceil(n / w)
    # Tile height: at most `tile_rows`, at least 8 (sublane granularity).
    tr = min(tile_rows, max(8, -(-rows // 8) * 8))
    rows_p = -(-rows // tr) * tr                        # pad rows to tile multiple
    n_pad = rows_p * w

    flat = jnp.ravel(x)
    if n_pad != n:
        flat = jnp.pad(flat, (0, n_pad - n))
    x2 = flat.reshape(rows_p, w)

    out = pl.pallas_call(
        _mish_kernel,
        out_shape=jax.ShapeDtypeStruct((rows_p, w), dtype),
        grid=(rows_p // tr,),
        in_specs=[pl.BlockSpec((tr, w), lambda i: (i, 0))],
        out_specs=pl.BlockSpec((tr, w), lambda i: (i, 0)),
        compiler_params=pltpu.CompilerParams(
            dimension_semantics=("parallel",)),
    )(x2)

    return out.reshape(-1)[:n].reshape(orig_shape)


if __name__ == "__main__":
    key = jax.random.PRNGKey(0)
    x = jax.random.normal(key, (2, 4, 16, 16), jnp.float32)

    y = mish(x)
    jax.block_until_ready(y)

    # Reference check against plain-JAX Mish.
    ref = x * jnp.tanh(jax.nn.softplus(x))
    assert y.shape == x.shape
    assert bool(jnp.allclose(y, ref, atol=1e-5, rtol=1e-5))

    print("KERNEL_OK")
</pallas_src>

<mosaic_0001>
module attributes {stable_mosaic.version = 11 : i64} {
  func.func @_mish_kernel(%arg0: i32, %arg1: memref<8x1024xf32, #tpu.memory_space<vmem>>, %arg2: memref<8x1024xf32, #tpu.memory_space<vmem>>) attributes {dimension_semantics = [#tpu.dimension_semantics<parallel>], iteration_bounds = array<i64: 1>, scalar_prefetch = 0 : i64, scratch_operands = 0 : i64, tpu.core_type = #tpu.core_type<tc>, window_params = [{transform_indices = @transform_0, window_bounds = array<i64: 8, 1024>}, {transform_indices = @transform_1, window_bounds = array<i64: 8, 1024>}]} {
    %c0 = arith.constant 0 : index
    %c0_0 = arith.constant 0 : index
    %0 = vector.load %arg1[%c0, %c0_0] : memref<8x1024xf32, #tpu.memory_space<vmem>>, vector<8x1024xf32>
    %cst = arith.constant 2.000000e+01 : f32
    %1 = vector.broadcast %cst : f32 to vector<8x1024xf32>
    %2 = arith.cmpf ogt, %0, %1 : vector<8x1024xf32>
    %cst_1 = arith.constant 2.000000e+01 : f32
    %3 = vector.broadcast %cst_1 : f32 to vector<8x1024xf32>
    %4 = arith.minimumf %0, %3 : vector<8x1024xf32>
    %5 = math.exp %4 : vector<8x1024xf32>
    %6 = math.log1p %5 : vector<8x1024xf32>
    %7 = arith.select %2, %0, %6 : vector<8x1024xi1>, vector<8x1024xf32>
    %8 = math.tanh %7 : vector<8x1024xf32>
    %9 = arith.mulf %0, %8 : vector<8x1024xf32>
    %c0_2 = arith.constant 0 : index
    %c0_3 = arith.constant 0 : index
    %10 = vector.load %arg2[%c0_2, %c0_3] : memref<8x1024xf32, #tpu.memory_space<vmem>>, vector<8x1024xf32>
    tpu.vector_store %arg2[%c0_2, %c0_3], %9 {strides = array<i32>} : memref<8x1024xf32, #tpu.memory_space<vmem>>, vector<8x1024xf32>,
    return
  }
  func.func @transform_0(%arg0: i32) -> (i32, i32) {
    %c0_i32 = arith.constant 0 : i32
    %c0_i32_0 = arith.constant 0 : i32
    return %arg0, %c0_i32 : i32, i32
  }
  func.func @transform_1(%arg0: i32) -> (i32, i32) {
    %c0_i32 = arith.constant 0 : i32
    %c0_i32_0 = arith.constant 0 : i32
    return %arg0, %c0_i32 : i32, i32
  }
}

</mosaic_0001>

<bundles_post_ra>
// kernel: tpu_custom_call.1
= control target key start
LH: loop header
LB: loop body
LE: loop exit
PB: predicated region body
PF: predicated region fallthrough
CT: control target
= control target key end

     0   :  { %6 = vsyncpa [#allocation3], 0  ;;  %s418_s0 = inlined_call_operand.hbm [shape: f32[8,1024], index: 0, kind: input, shape index: {}]   ;;  %s419_s1 = inlined_call_operand.hbm [shape: f32[8,1024], index: 1, kind: output, shape index: {}]  }
   0x1   :  { %7 = vsyncpa [#allocation4], 0  ;;  %s13_s8 = sshll.u32 %s418_s0, 4  ;;  %s286_s9 = smov [#allocation2]   ;;  %s14_s8 = int_to_ptr.hbm [resolvable:$true] %s13_s8 }
   0x2   :  { %s15_s10 = sshll.u32 %s286_s9, 4  ;;  %s16_s10 = int_to_ptr.vmem [resolvable:$true] %s15_s10 }
   0x3   :  { %18 = dma.hbm_to_vmem [thread:$0]  %s14_s8, 1024, %s16_s10, [#allocation3]  }
   0x4   :  { %282 = dma.done.wait [#allocation3], 1024  }
   0x5   :  { %283 = vsyncadd [#allocation3], 4294966272  ;;  %v301_v0 = vld [vmem:[#allocation2] sm:$0xff]  ;;  %v303_v1 = vld [vmem:[#allocation2 + $0x8] sm:$0xff]  ;;  %s287_s0 = smov [#allocation5]   ;;  %s174_s14 = sshll.u32 %s419_s1, 4  ;;  %s175_s14 = int_to_ptr.hbm [resolvable:$true] %s174_s14 }
   0x6   :  { %v305_v2 = vld [vmem:[#allocation2 + $0x10] sm:$0xff]  ;;  %v39_v3 = vmin.f32 %v301_v0, 20.0  ;;  %v40_v4 = vmin.f32 %v303_v1, 20.0  ;;  %v309_v5 = vld [vmem:[#allocation2 + $0x18] sm:$0xff]  ;;  %v311_v6 = vld [vmem:[#allocation2 + $0x20] sm:$0xff]  ;;  %vm31_vm0 = vcmp.gt.f32.partialorder %v301_v0, 20.0 }
   0x7   :  { %v41_v7 = vmin.f32 %v305_v2, 20.0  ;;  %v42_v8 = vmin.f32 %v309_v5, 20.0  ;;  %v315_v9 = vld [vmem:[#allocation2 + $0x28] sm:$0xff]  ;;  %v317_v10 = vld [vmem:[#allocation2 + $0x30] sm:$0xff]  ;;  %v43_v13 = vmin.f32 %v311_v6, 20.0  ;;  %v322_v19 = vld [vmem:[#allocation2 + $0x38] sm:$0xff] }
   0x8   :  { %v47_v11 = vmul.f32 1.442695, %v39_v3  ;;  %v49_v12 = vmul.f32 1.442695, %v40_v4  ;;  %v44_v16 = vmin.f32 %v315_v9, 20.0  ;;  %v45_v18 = vmin.f32 %v317_v10, 20.0 }
   0x9   :  { %v51_v14 = vmul.f32 1.442695, %v41_v7  ;;  %v53_v15 = vmul.f32 1.442695, %v42_v8  ;;  %v55_v17 = vmul.f32 1.442695, %v43_v13 }
   0xa   :  { %186 = vpow2.f32 %v47_v11  ;;  %v46_v20 = vmin.f32 %v322_v19, 20.0  ;;  %v57_v21 = vmul.f32 1.442695, %v44_v16  ;;  %v59_v22 = vmul.f32 1.442695, %v45_v18  ;;  %s172_s11 = sshll.u32 %s287_s0, 4  ;;  %s173_s11 = int_to_ptr.vmem [resolvable:$true] %s172_s11 }
   0xb   :  { %188 = vpow2.f32 %v49_v12  ;;  %vm32_vm1 = vcmp.gt.f32.partialorder %v303_v1, 20.0  ;;  %vm33_vm2 = vcmp.gt.f32.partialorder %v305_v2, 20.0  ;;  %vm34_vm4 = vcmp.gt.f32.partialorder %v309_v5, 20.0 }
   0xc   :  { %190 = vpow2.f32 %v51_v14  ;;  %v61_v23 = vmul.f32 1.442695, %v46_v20  ;;  %vm35_vm7 = vcmp.gt.f32.partialorder %v311_v6, 20.0  ;;  %vm36_vm9 = vcmp.gt.f32.partialorder %v315_v9, 20.0 }
   0xd   :  { %192 = vpow2.f32 %v53_v15  ;;  %vm37_vm13 = vcmp.gt.f32.partialorder %v317_v10, 20.0  ;;  %vm38_vm15 = vcmp.gt.f32.partialorder %v322_v19, 20.0 }
   0xe   :  { %194 = vpow2.f32 %v55_v17 }
   0xf   :  { %196 = vpow2.f32 %v57_v21 }
  0x10   :  { %v187_v24 = vpop.eup %186  ;;  %198 = vpow2.f32 %v59_v22 }
  0x11   :  { %v189_v25 = vpop.eup %188  ;;  %v63_v26 = vadd.f32 1.0, %v187_v24  ;;  %v66_v27 = vmul.f32 -0.5, %v187_v24  ;;  %v69_v29 = vand.u32 2147483647, %v187_v24  ;;  %200 = vpow2.f32 %v61_v23 }
  0x12   :  { %v191_v28 = vpop.eup %190  ;;  %v72_v30 = vadd.f32 1.0, %v189_v25  ;;  %v75_v31 = vmul.f32 -0.5, %v189_v25  ;;  %v78_v33 = vand.u32 2147483647, %v189_v25 }
  0x13   :  { %v193_v32 = vpop.eup %192  ;;  %202 = vlog2.f32 %v63_v26  ;;  %v81_v34 = vadd.f32 1.0, %v191_v28  ;;  %v67_v36 = vadd.f32 1.0, %v66_v27  ;;  %v84_v38 = vmul.f32 -0.5, %v191_v28 }
  0x14   :  { %v195_v35 = vpop.eup %194  ;;  %204 = vlog2.f32 %v72_v30  ;;  %v76_v37 = vadd.f32 1.0, %v75_v31  ;;  %v87_v39 = vand.u32 2147483647, %v191_v28  ;;  %v90_v40 = vadd.f32 1.0, %v193_v32 }
  0x15   :  { %206 = vlog2.f32 %v81_v34  ;;  %v197_v41 = vpop.eup %196  ;;  %vm328_vm3 = vcmp.lt.f32.partialorder %v69_v29, 0.0004427343  ;;  %v85_v43 = vadd.f32 1.0, %v84_v38  ;;  %v93_v44 = vmul.f32 -0.5, %v193_v32 }
  0x16   :  { %v96_v45 = vand.u32 2147483647, %v193_v32  ;;  %v333_v46 = vpop.eup %198  ;;  %vm335_vm5 = vcmp.lt.f32.partialorder %v78_v33, 0.0004427343  ;;  %208 = vlog2.f32 %v90_v40  ;;  %v99_v48 = vadd.f32 1.0, %v195_v35 }
  0x17   :  { %v102_v49 = vmul.f32 -0.5, %v195_v35  ;;  %v339_v50 = vpop.eup %200  ;;  %v68_v51 = vmul.f32 %v187_v24, %v67_v36  ;;  %v77_v52 = vmul.f32 %v189_v25, %v76_v37  ;;  %vm341_vm6 = vcmp.lt.f32.partialorder %v87_v39, 0.0004427343 }
  0x18   :  { %v94_v54 = vadd.f32 1.0, %v93_v44  ;;  %210 = vlog2.f32 %v99_v48  ;;  %v108_v57 = vadd.f32 1.0, %v197_v41  ;;  %v111_v58 = vmul.f32 -0.5, %v197_v41 }
  0x19   :  { %v203_v55 = vpop.eup %202  ;;  %v103_v56 = vadd.f32 1.0, %v102_v49  ;;  %v86_v61 = vmul.f32 %v191_v28, %v85_v43  ;;  %vm346_vm8 = vcmp.lt.f32.partialorder %v96_v45, 0.0004427343  ;;  %v105_v63 = vand.u32 2147483647, %v195_v35 }
  0x1a   :  { %v205_v59 = vpop.eup %204  ;;  %v65_v60 = vmul.f32 0.6931472, %v203_v55  ;;  %v95_v7 = vmul.f32 %v193_v32, %v94_v54  ;;  %212 = vlog2.f32 %v108_v57  ;;  %v112_v8 = vadd.f32 1.0, %v111_v58 }
  0x1b   :  { %v207_v3 = vpop.eup %206  ;;  %v74_v4 = vmul.f32 0.6931472, %v205_v59  ;;  %v104_v13 = vmul.f32 %v195_v35, %v103_v56  ;;  %v114_v14 = vand.u32 2147483647, %v197_v41  ;;  %v117_v18 = vadd.f32 1.0, %v333_v46 }
  0x1c   :  { %v71_v11 = vsel %vm328_vm3, %v68_v51, %v65_v60  ;;  %v83_v12 = vmul.f32 0.6931472, %v207_v3  ;;  %v209_v15 = vpop.eup %208  ;;  %v120_v20 = vmul.f32 -0.5, %v333_v46  ;;  %vm368_vm10 = vcmp.lt.f32.partialorder %v105_v63, 0.0004427343 }
  0x1d   :  { %v135_v16 = vsel %vm31_vm0, %v301_v0, %v71_v11  ;;  %v80_v17 = vsel %vm335_vm5, %v77_v52, %v74_v4  ;;  %v92_v23 = vmul.f32 0.6931472, %v209_v15  ;;  %v113_v27 = vmul.f32 %v197_v41, %v112_v8 }
  0x1e   :  { %214 = vtanh.f32 %v135_v16  ;;  %v136_v21 = vsel %vm32_vm1, %v303_v1, %v80_v17  ;;  %v89_v22 = vsel %vm341_vm6, %v86_v61, %v83_v12  ;;  %v211_v24 = vpop.eup %210  ;;  %v126_v30 = vadd.f32 1.0, %v339_v50 }
  0x1f   :  { %216 = vtanh.f32 %v136_v21  ;;  %v137_v25 = vsel %vm33_vm2, %v305_v2, %v89_v22  ;;  %v98_v28 = vsel %vm346_vm8, %v95_v7, %v92_v23  ;;  %v101_v29 = vmul.f32 0.6931472, %v211_v24 }
  0x20   :  { %218 = vtanh.f32 %v137_v25  ;;  %v213_v31 = vpop.eup %212  ;;  %v138_v32 = vsel %vm34_vm4, %v309_v5, %v98_v28  ;;  %vm378_vm11 = vcmp.lt.f32.partialorder %v114_v14, 0.0004427343  ;;  %v121_v34 = vadd.f32 1.0, %v120_v20 }
  0x21   :  { %220 = vlog2.f32 %v117_v18  ;;  %v107_v35 = vsel %vm368_vm10, %v104_v13, %v101_v29  ;;  %v110_v36 = vmul.f32 0.6931472, %v213_v31  ;;  %v129_v37 = vmul.f32 -0.5, %v339_v50 }
  0x22   :  { %222 = vtanh.f32 %v138_v32  ;;  %v139_v38 = vsel %vm35_vm7, %v311_v6, %v107_v35  ;;  %v123_v39 = vand.u32 2147483647, %v333_v46  ;;  %v132_v47 = vand.u32 2147483647, %v339_v50 }
  0x23   :  { %224 = vlog2.f32 %v126_v30  ;;  %v116_v41 = vsel %vm378_vm11, %v113_v27, %v110_v36  ;;  %v130_v42 = vadd.f32 1.0, %v129_v37  ;;  %v122_v51 = vmul.f32 %v333_v46, %v121_v34 }
  0x24   :  { %v215_v40 = vpop.eup %214  ;;  %226 = vtanh.f32 %v139_v38  ;;  %v140_v45 = vsel %vm36_vm9, %v315_v9, %v116_v41  ;;  %vm399_vm12 = vcmp.lt.f32.partialorder %v123_v39, 0.0004427343  ;;  %vm133_vm14 = vcmp.lt.f32.partialorder %v132_v47, 0.0004427343 }
  0x25   :  { %v217_v43 = vpop.eup %216  ;;  %v151_v44 = vmul.f32 %v215_v40, %v301_v0  ;;  %228 = vtanh.f32 %v140_v45  ;;  %v131_v56 = vmul.f32 %v339_v50, %v130_v42 }
  0x26   :  { %v219_v48 = vpop.eup %218  ;;  %v152_v49 = vmul.f32 %v217_v43, %v303_v1 }
  0x27   :  { %v221_v52 = vpop.eup %220  ;;  %159 = vst [vmem:[#allocation5] sm:$0xff] %v151_v44  ;;  %v153_v53 = vmul.f32 %v219_v48, %v305_v2 }
  0x28   :  { %v223_v0 = vpop.eup %222  ;;  %160 = vst [vmem:[#allocation5 + $0x8] sm:$0xff] %v152_v49  ;;  %v119_v55 = vmul.f32 0.6931472, %v221_v52 }
  0x29   :  { %v225_v57 = vpop.eup %224  ;;  %161 = vst [vmem:[#allocation5 + $0x10] sm:$0xff] %v153_v53  ;;  %v154_v1 = vmul.f32 %v223_v0, %v309_v5 }
  0x2a   :  { %v227_v46 = vpop.eup %226  ;;  %v125_v2 = vsel %vm399_vm12, %v122_v51, %v119_v55  ;;  %v128_v58 = vmul.f32 0.6931472, %v225_v57 }
  0x2b   :  { %162 = vst [vmem:[#allocation5 + $0x18] sm:$0xff] %v154_v1  ;;  %v155_v59 = vmul.f32 %v227_v46, %v311_v6  ;;  %v141_v60 = vsel %vm37_vm13, %v317_v10, %v125_v2  ;;  %v229_v61 = vpop.eup %228 }
  0x2c   :  { %230 = vtanh.f32 %v141_v60  ;;  %v134_v50 = vsel %vm133_vm14, %v131_v56, %v128_v58  ;;  %v156_v62 = vmul.f32 %v229_v61, %v315_v9 }
  0x2d   :  { %163 = vst [vmem:[#allocation5 + $0x20] sm:$0xff] %v155_v59  ;;  %v142_v5 = vsel %vm38_vm15, %v322_v19, %v134_v50 }
  0x2e   :  { %232 = vtanh.f32 %v142_v5  ;;  %164 = vst [vmem:[#allocation5 + $0x28] sm:$0xff] %v156_v62 }
  0x32   :  { %v231_v63 = vpop.eup %230 }
  0x33   :  { %v157_v6 = vmul.f32 %v231_v63, %v317_v10 }
  0x34   :  { %v233_v3 = vpop.eup %232 }
  0x35   :  { %165 = vst [vmem:[#allocation5 + $0x30] sm:$0xff] %v157_v6  ;;  %v158_v4 = vmul.f32 %v233_v3, %v322_v19 }
  0x37   :  { %166 = vst [vmem:[#allocation5 + $0x38] sm:$0xff] %v158_v4 }
  0x38   :  { %177 = dma.vmem_to_hbm [thread:$0]  %s173_s11, 1024, %s175_s14, [#allocation4]  }
  0x39   :  { %284 = dma.done.wait [#allocation4], 1024  }
  0x3a   :  { %285 = vsyncadd [#allocation4], 4294966272 }
  0x3b   :  { %182 = vsyncpa [#allocation3], 1 }
  0x3c   :  { %183 = vsyncpa [#allocation4], 1 }

</bundles_post_ra>
